<compile_context>
chip_gen: v6e
topology: v6e:2x2x1
jax: 0.10.0
libtpu: 0.0.40
codegen_flags: <defaults>
</compile_context>

<pallas_src>
import jax
import jax.numpy as jnp
from jax.experimental import pallas as pl
from jax.experimental.pallas import tpu as pltpu


def _round_up(a, b):
    return (a + b - 1) // b * b


def _vmem_limit_bytes():
    """Per-kernel VMEM budget derived from the device's physical VMEM."""
    cap = 64 * 1024 * 1024  # conservative default (v7x per-TensorCore)
    try:
        cap = int(pltpu.get_tpu_info().vmem_capacity_bytes)
    except Exception:
        pass
    if cap >= 100 * 1024 * 1024:                 # v5e / v6e: 128 MiB physical
        return 96 * 1024 * 1024
    return max(32 * 1024 * 1024, cap - 24 * 1024 * 1024)   # v7x: ~40 MiB


# --------------------------------------------------------------------------
# Kernels
# --------------------------------------------------------------------------
def _fast_kernel(x_ref, w_ref, out_ref, probs_ref):
    """Single-step: scores -> softmax(dim 0) -> scale, with x resident."""
    x = x_ref[...].astype(jnp.float32)                 # (N, D)
    w = w_ref[...].astype(jnp.float32)                 # (1, D) weight row
    # VPU multiply + XLU lane reduction.
    scores = jnp.sum(x * w, axis=1, keepdims=True)     # (N, 1)
    m = jnp.max(scores, axis=0, keepdims=True)
    e = jnp.exp(scores - m)
    denom = jnp.sum(e, axis=0, keepdims=True)
    probs = e * pl.reciprocal(denom, approx=False)     # (N, 1)
    probs_ref[...] = probs.astype(probs_ref.dtype)
    out_ref[...] = (x * probs).astype(out_ref.dtype)


def _score_kernel(x_ref, w_ref, s_ref):
    """Per-tile partial scores; ragged last tile rows are dropped on store."""
    prod = x_ref[...].astype(jnp.float32) * w_ref[...].astype(jnp.float32)
    s_ref[...] = jnp.sum(prod, axis=1, keepdims=True)


def _scale_kernel(x_ref, p_ref, o_ref):
    """attended_x tile = x tile * probs tile (row broadcast)."""
    o_ref[...] = (x_ref[...].astype(jnp.float32) * p_ref[...]).astype(o_ref.dtype)


# --------------------------------------------------------------------------
# Wrapper
# --------------------------------------------------------------------------
def attention_module(x, attention_weights, *, tile_n=None, force_tiled=False):
    """Pallas equivalent of AttentionModule.forward.

    Args:
      x: (N, D) float array of node features.
      attention_weights: (D, 1) float parameter.
      tile_n: optional row-tile override for the streaming path.
      force_tiled: force the streaming (two-call) path even for small N.

    Returns:
      (attended_x, attention_probs) with shapes (N, D) and (N,).
    """
    n, d = x.shape
    assert attention_weights.shape == (d, 1)
    w_row = attention_weights.reshape(1, d)

    vmem_limit = _vmem_limit_bytes()
    d_pad = _round_up(d, 128)
    n8 = _round_up(n, 8)

    # ---------------- single-pass x-resident fast path ----------------
    # VMEM need: x in + attended out + (N,1) probs column + weight row,
    # counted twice to stay safe against pipeline double-buffering.
    fast_need = 2 * 4 * (2 * n8 * d_pad + n8 * 128 + 8 * d_pad)
    use_fast = (not force_tiled) and n <= 16384 and fast_need <= int(0.8 * vmem_limit)

    if use_fast:
        attended, probs = pl.pallas_call(
            _fast_kernel,
            out_shape=(
                jax.ShapeDtypeStruct((n, d), x.dtype),
                jax.ShapeDtypeStruct((n, 1), jnp.float32),
            ),
            grid_spec=pltpu.PrefetchScalarGridSpec(
                num_scalar_prefetch=0,
                grid=(1,),
                in_specs=[
                    pl.BlockSpec((n, d), lambda i: (0, 0)),
                    pl.BlockSpec((1, d), lambda i: (0, 0)),
                ],
                out_specs=(
                    pl.BlockSpec((n, d), lambda i: (0, 0)),
                    pl.BlockSpec((n, 1), lambda i: (0, 0)),
                ),
            ),
            compiler_params=pltpu.CompilerParams(
                dimension_semantics=("arbitrary",),
                vmem_limit_bytes=vmem_limit,
            ),
        )(x, w_row)
        return attended, probs[:, 0]

    # ---------------- streaming path (large N) ------------------------
    bytes_per_row_x = d_pad * 4
    # Heavier call (scale pass): x in + attended out double-buffered, plus the
    # lane-padded (tile_n, 1) probs block, double-buffered.
    per_row = 2 * (2 * bytes_per_row_x) + 2 * 128 * 4
    if tile_n is None:
        tile_n = max(8, (4 * 1024 * 1024) // bytes_per_row_x)   # ~4 MiB x blocks
    tile_n = min(int(tile_n), max(8, int(0.6 * vmem_limit) // per_row), n8)
    tile_n = max(8, (tile_n // 8) * 8)
    num_tiles = -(-n // tile_n)   # ragged last tile -> Pallas partial block

    compiler_params = pltpu.CompilerParams(
        dimension_semantics=("parallel",),
        vmem_limit_bytes=vmem_limit,
    )

    # Pass 1: per-row scores.
    scores = pl.pallas_call(
        _score_kernel,
        out_shape=jax.ShapeDtypeStruct((n, 1), jnp.float32),
        grid_spec=pltpu.PrefetchScalarGridSpec(
            num_scalar_prefetch=0,
            grid=(num_tiles,),
            in_specs=[
                pl.BlockSpec((tile_n, d), lambda i: (i, 0)),
                pl.BlockSpec((1, d), lambda i: (0, 0)),
            ],
            out_specs=pl.BlockSpec((tile_n, 1), lambda i: (i, 0)),
        ),
        compiler_params=compiler_params,
    )(x, w_row)

    # Tiny O(N) vector softmax over dim 0 (negligible next to the streaming
    # passes; keeps the row-tile grids fully parallel across TensorCores).
    probs = jax.nn.softmax(scores, axis=0)              # (N, 1) float32

    # Pass 2: scale x tiles by the matching probs tile.
    attended = pl.pallas_call(
        _scale_kernel,
        out_shape=jax.ShapeDtypeStruct((n, d), x.dtype),
        grid_spec=pltpu.PrefetchScalarGridSpec(
            num_scalar_prefetch=0,
            grid=(num_tiles,),
            in_specs=[
                pl.BlockSpec((tile_n, d), lambda i: (i, 0)),
                pl.BlockSpec((tile_n, 1), lambda i: (i, 0)),
            ],
            out_specs=pl.BlockSpec((tile_n, d), lambda i: (i, 0)),
        ),
        compiler_params=compiler_params,
    )(x, probs)

    return attended, probs[:, 0]


def init_attention_weights(key, input_dim):
    """Deterministic Xavier-uniform init matching nn.init.xavier_uniform_."""
    fan_in, fan_out = input_dim, 1
    bound = (6.0 / (fan_in + fan_out)) ** 0.5
    return jax.random.uniform(
        key, (input_dim, 1), dtype=jnp.float32, minval=-bound, maxval=bound
    )


def _reference(x, w):
    scores = jnp.sum(x * w[:, 0][None, :], axis=1)
    probs = jax.nn.softmax(scores, axis=0)
    return x * probs[:, None], probs


if __name__ == "__main__":
    key = jax.random.PRNGKey(0)
    k1, k2, k3, k4, k5, k6 = jax.random.split(key, 6)

    # Case 1: benchmarked shape (N=256, D=128) -> single-pass fast path.
    N1, D1 = 256, 128
    x1 = jax.random.normal(k1, (N1, D1), dtype=jnp.float32)
    w1 = init_attention_weights(k2, D1)
    a1, p1 = attention_module(x1, w1)
    jax.block_until_ready((a1, p1))
    ra1, rp1 = _reference(x1, w1)
    assert a1.shape == (N1, D1) and p1.shape == (N1,)
    assert jnp.allclose(a1, ra1, atol=1e-5, rtol=1e-5)
    assert jnp.allclose(p1, rp1, atol=1e-5, rtol=1e-5)

    # Case 2: module's tiny input_dim=32 config with ragged N -> fast path,
    # full-array (unaligned) blocks, no padding needed.
    N2, D2 = 37, 32
    x2 = jax.random.normal(k3, (N2, D2), dtype=jnp.float32)
    w2 = init_attention_weights(k4, D2)
    a2, p2 = attention_module(x2, w2)
    jax.block_until_ready((a2, p2))
    ra2, rp2 = _reference(x2, w2)
    assert a2.shape == (N2, D2) and p2.shape == (N2,)
    assert jnp.allclose(a2, ra2, atol=1e-5, rtol=1e-5)
    assert jnp.allclose(p2, rp2, atol=1e-5, rtol=1e-5)

    # Case 3: exercise the streaming two-call path with a ragged last tile.
    N3, D3 = 300, 64
    x3 = jax.random.normal(k5, (N3, D3), dtype=jnp.float32)
    w3 = init_attention_weights(k6, D3)
    a3, p3 = attention_module(x3, w3, tile_n=128, force_tiled=True)
    jax.block_until_ready((a3, p3))
    ra3, rp3 = _reference(x3, w3)
    assert a3.shape == (N3, D3) and p3.shape == (N3,)
    assert jnp.allclose(a3, ra3, atol=1e-5, rtol=1e-5)
    assert jnp.allclose(p3, rp3, atol=1e-5, rtol=1e-5)

    print("KERNEL_OK")
</pallas_src>

<mosaic_0001>
module attributes {stable_mosaic.version = 11 : i64} {
  func.func @_fast_kernel(%arg0: i32, %arg1: memref<256x128xf32, #tpu.memory_space<vmem>>, %arg2: memref<1x128xf32, #tpu.memory_space<vmem>>, %arg3: memref<256x128xf32, #tpu.memory_space<vmem>>, %arg4: memref<256x1xf32, #tpu.memory_space<vmem>>) attributes {dimension_semantics = [#tpu.dimension_semantics<arbitrary>], iteration_bounds = array<i64: 1>, scalar_prefetch = 0 : i64, scratch_operands = 0 : i64, tpu.core_type = #tpu.core_type<tc>, window_params = [{pipeline_mode = #tpu.pipeline_mode<synchronous>, transform_indices = @transform_0, window_bounds = array<i64: 256, 128>}, {pipeline_mode = #tpu.pipeline_mode<synchronous>, transform_indices = @transform_1, window_bounds = array<i64: 1, 128>}, {pipeline_mode = #tpu.pipeline_mode<synchronous>, transform_indices = @transform_2, window_bounds = array<i64: 256, 128>}, {pipeline_mode = #tpu.pipeline_mode<synchronous>, transform_indices = @transform_3, window_bounds = array<i64: 256, 1>}]} {
    %c0 = arith.constant 0 : index
    %c0_0 = arith.constant 0 : index
    %0 = vector.load %arg1[%c0, %c0_0] : memref<256x128xf32, #tpu.memory_space<vmem>>, vector<256x128xf32>
    %c0_1 = arith.constant 0 : index
    %c0_2 = arith.constant 0 : index
    %1 = vector.load %arg2[%c0_1, %c0_2] : memref<1x128xf32, #tpu.memory_space<vmem>>, vector<1x128xf32>
    %2 = vector.broadcast %1 : vector<1x128xf32> to vector<256x128xf32>
    %3 = arith.mulf %0, %2 : vector<256x128xf32>
    %cst = arith.constant dense<0.000000e+00> : vector<256xf32>
    %4 = vector.multi_reduction <add>, %3, %cst [1] : vector<256x128xf32> to vector<256xf32>
    %5 = vector.shape_cast %4 : vector<256xf32> to vector<256x1xf32>
    %cst_3 = arith.constant dense<0xFF800000> : vector<1xf32>
    %6 = vector.multi_reduction <maximumf>, %5, %cst_3 [0] : vector<256x1xf32> to vector<1xf32>
    %7 = vector.shape_cast %6 : vector<1xf32> to vector<1x1xf32>
    %8 = vector.broadcast %7 : vector<1x1xf32> to vector<256x1xf32>
    %9 = arith.subf %5, %8 : vector<256x1xf32>
    %10 = math.exp %9 : vector<256x1xf32>
    %cst_4 = arith.constant dense<0.000000e+00> : vector<1xf32>
    %11 = vector.multi_reduction <add>, %10, %cst_4 [0] : vector<256x1xf32> to vector<1xf32>
    %12 = vector.shape_cast %11 : vector<1xf32> to vector<1x1xf32>
    %13 = tpu.reciprocal %12 : vector<1x1xf32> -> vector<1x1xf32>
    %14 = vector.broadcast %13 : vector<1x1xf32> to vector<256x1xf32>
    %15 = arith.mulf %10, %14 : vector<256x1xf32>
    %c0_5 = arith.constant 0 : index
    %c0_6 = arith.constant 0 : index
    %16 = vector.load %arg4[%c0_5, %c0_6] : memref<256x1xf32, #tpu.memory_space<vmem>>, vector<256x1xf32>
    tpu.vector_store %arg4[%c0_5, %c0_6], %15 {strides = array<i32>} : memref<256x1xf32, #tpu.memory_space<vmem>>, vector<256x1xf32>,
    %17 = vector.broadcast %15 : vector<256x1xf32> to vector<256x128xf32>
    %18 = arith.mulf %0, %17 : vector<256x128xf32>
    %c0_7 = arith.constant 0 : index
    %c0_8 = arith.constant 0 : index
    %19 = vector.load %arg3[%c0_7, %c0_8] : memref<256x128xf32, #tpu.memory_space<vmem>>, vector<256x128xf32>
    tpu.vector_store %arg3[%c0_7, %c0_8], %18 {strides = array<i32>} : memref<256x128xf32, #tpu.memory_space<vmem>>, vector<256x128xf32>,
    return
  }
  func.func @transform_0(%arg0: i32) -> (i32, i32) {
    %c0_i32 = arith.constant 0 : i32
    %c0_i32_0 = arith.constant 0 : i32
    %c0_i32_1 = arith.constant 0 : i32
    return %c0_i32, %c0_i32_0 : i32, i32
  }
  func.func @transform_1(%arg0: i32) -> (i32, i32) {
    %c0_i32 = arith.constant 0 : i32
    %c0_i32_0 = arith.constant 0 : i32
    %c0_i32_1 = arith.constant 0 : i32
    return %c0_i32, %c0_i32_0 : i32, i32
  }
  func.func @transform_2(%arg0: i32) -> (i32, i32) {
    %c0_i32 = arith.constant 0 : i32
    %c0_i32_0 = arith.constant 0 : i32
    %c0_i32_1 = arith.constant 0 : i32
    return %c0_i32, %c0_i32_0 : i32, i32
  }
  func.func @transform_3(%arg0: i32) -> (i32, i32) {
    %c0_i32 = arith.constant 0 : i32
    %c0_i32_0 = arith.constant 0 : i32
    %c0_i32_1 = arith.constant 0 : i32
    return %c0_i32, %c0_i32_0 : i32, i32
  }
}

</mosaic_0001>

<bundles_post_ra>
// kernel: tpu_custom_call.1
= control target key start
LH: loop header
LB: loop body
LE: loop exit
PB: predicated region body
PF: predicated region fallthrough
CT: control target
= control target key end

     0   :  { %9 = vsyncpa [#allocation3], 0  ;;  %s1290_s0 = inlined_call_operand.hbm [shape: f32[256,128], index: 0, kind: input, shape index: {}]   ;;  %s1291_s1 = inlined_call_operand.vmem [shape: f32[1,128], index: 1, kind: input, shape index: {}]   ;;  %s1292_s2 = inlined_call_operand.hbm [shape: f32[256,128], index: 2, kind: output, shape index: {0}]   ;;  %s1293_s3 = inlined_call_operand.vmem [shape: f32[256,1], index: 3, kind: output, shape index: {1}]  }
   0x1   :  { %10 = vsyncpa [#allocation4], 0  ;;  %s599_s12 = smov [#allocation2]  }
   0x2   :  { %s16_s13 = sshll.u32 %s599_s12, 4  ;;  %s17_s13 = int_to_ptr.vmem [resolvable:$true] %s16_s13 }
   0x3   :  { %s563_s14 = scalar_lea.vmem %s17_s13, 4096  ;;  %p568_p1 = scmp.lt.s32.totalorder %s17_s13, %s17_s13 }
   0x4   :  { %p564_p0 = scmp.ne.s32.totalorder %s17_s13, %s563_s14  ;;  %p569_p2 = scmp.lt.s32.totalorder %s563_s14, %s563_s14 }
   0x6   :  { %p570_p3 = por %p569_p2, %p568_p1 }
   0x8   :  { %p571_p4 = pnand %p570_p3, %p564_p0 }
   0xa   :  { %574 = shalt.err (!%p571_p4)
}
   0xb   :  { %s600_s15 = smov 128   ;;  %s601_s16 = smov 8  }
   0xc   :  { %22 = dma.hbm_to_vmem [thread:$0]  %s1290_s0, 4096, %s17_s13, [#allocation3], %s600_s15, %s600_s15, %s601_s16  }
   0xd   :  { %595 = dma.done.wait [#allocation3], 4096  }
   0xe   :  { %596 = vsyncadd [#allocation3], 4294963200  ;;  %v629_v0 = vld [vmem:[#allocation2 + $0x10] sm:$0xff]  ;;  %v634_v1 = vld [vmem:[%s1291_s1] ss:$0 sm:$0xff]  ;;  %vm366_vm0 = vcmask 7168  }
   0xf   :  { %v636_v2 = vld [vmem:[#allocation2] sm:$0xff]  ;;  %v69_v3 = vmul.f32 %v634_v1, %v629_v0  ;;  %v642_v5 = vld [vmem:[#allocation2 + $0x18] sm:$0xff]  ;;  %v644_v6 = vld [vmem:[#allocation2 + $0x8] sm:$0xff] }
  0x10   :  { %v67_v4 = vmul.f32 %v634_v1, %v636_v2  ;;  %v70_v7 = vmul.f32 %v634_v1, %v642_v5  ;;  %v68_v8 = vmul.f32 %v634_v1, %v644_v6  ;;  %v650_v9 = vld [vmem:[#allocation2 + $0x28] sm:$0xff]  ;;  %v652_v10 = vld [vmem:[#allocation2 + $0x20] sm:$0xff]  ;;  %v658_v13 = vld [vmem:[#allocation2 + $0x38] sm:$0xff] }
  0x11   :  { %103 = vadd.xlane.f32.xlu1 %v69_v3  ;;  %v72_v11 = vmul.f32 %v634_v1, %v650_v9  ;;  %v71_v12 = vmul.f32 %v634_v1, %v652_v10  ;;  %v660_v14 = vld [vmem:[#allocation2 + $0x30] sm:$0xff]  ;;  %v74_v15 = vmul.f32 %v634_v1, %v658_v13  ;;  %v666_v17 = vld [vmem:[#allocation2 + $0x48] sm:$0xff]  ;;  %v668_v18 = vld [vmem:[#allocation2 + $0x40] sm:$0xff] }
  0x12   :  { %99 = vadd.xlane.f32.xlu0 %v67_v4  ;;  %v73_v16 = vmul.f32 %v634_v1, %v660_v14  ;;  %v76_v19 = vmul.f32 %v634_v1, %v666_v17  ;;  %v75_v20 = vmul.f32 %v634_v1, %v668_v18  ;;  %v674_v21 = vld [vmem:[#allocation2 + $0x58] sm:$0xff]  ;;  %v676_v22 = vld [vmem:[#allocation2 + $0x50] sm:$0xff]  ;;  %v682_v25 = vld [vmem:[#allocation2 + $0x68] sm:$0xff] }
  0x13   :  { %v78_v23 = vmul.f32 %v634_v1, %v674_v21  ;;  %v77_v24 = vmul.f32 %v634_v1, %v676_v22  ;;  %v684_v26 = vld [vmem:[#allocation2 + $0x60] sm:$0xff]  ;;  %v80_v27 = vmul.f32 %v634_v1, %v682_v25  ;;  %v690_v29 = vld [vmem:[#allocation2 + $0x78] sm:$0xff]  ;;  %v692_v30 = vld [vmem:[#allocation2 + $0x70] sm:$0xff] }
  0x14   :  { %v79_v28 = vmul.f32 %v634_v1, %v684_v26  ;;  %1311 = vst [vmem:[#allocation8_spill] sm:$0xff] %v690_v29  ;;  %1312 = vst [vmem:[#allocation9_spill] sm:$0xff] %v692_v30  ;;  %v82_v31 = vmul.f32 %v634_v1, %v690_v29  ;;  %v81_v32 = vmul.f32 %v634_v1, %v692_v30  ;;  %v698_v33 = vld [vmem:[#allocation2 + $0x88] sm:$0xff]  ;;  %v700_v34 = vld [vmem:[#allocation2 + $0x80] sm:$0xff] }
  0x15   :  { %105 = vadd.xlane.f32.xlu1 %v70_v7  ;;  %1313 = vst [vmem:[#allocation10_spill] sm:$0xff] %v698_v33  ;;  %1314 = vst [vmem:[#allocation11_spill] sm:$0xff] %v700_v34  ;;  %v84_v35 = vmul.f32 %v634_v1, %v698_v33  ;;  %v83_v36 = vmul.f32 %v634_v1, %v700_v34  ;;  %v706_v37 = vld [vmem:[#allocation2 + $0x98] sm:$0xff]  ;;  %v708_v38 = vld [vmem:[#allocation2 + $0x90] sm:$0xff] }
  0x16   :  { %101 = vadd.xlane.f32.xlu0 %v68_v8  ;;  %1315 = vst [vmem:[#allocation12_spill] sm:$0xff] %v706_v37  ;;  %1316 = vst [vmem:[#allocation13_spill] sm:$0xff] %v708_v38  ;;  %v86_v39 = vmul.f32 %v634_v1, %v706_v37  ;;  %v85_v40 = vmul.f32 %v634_v1, %v708_v38  ;;  %v714_v41 = vld [vmem:[#allocation2 + $0xa8] sm:$0xff]  ;;  %v716_v42 = vld [vmem:[#allocation2 + $0xa0] sm:$0xff] }
  0x17   :  { %1317 = vst [vmem:[#allocation14_spill] sm:$0xff] %v714_v41  ;;  %1318 = vst [vmem:[#allocation15_spill] sm:$0xff] %v716_v42  ;;  %v88_v43 = vmul.f32 %v634_v1, %v714_v41  ;;  %v87_v44 = vmul.f32 %v634_v1, %v716_v42  ;;  %v722_v45 = vld [vmem:[#allocation2 + $0xb8] sm:$0xff]  ;;  %v724_v46 = vld [vmem:[#allocation2 + $0xb0] sm:$0xff] }
  0x18   :  { %1319 = vst [vmem:[#allocation16_spill] sm:$0xff] %v722_v45  ;;  %1320 = vst [vmem:[#allocation17_spill] sm:$0xff] %v724_v46  ;;  %v90_v47 = vmul.f32 %v634_v1, %v722_v45  ;;  %v89_v48 = vmul.f32 %v634_v1, %v724_v46  ;;  %v730_v49 = vld [vmem:[#allocation2 + $0xc8] sm:$0xff]  ;;  %v732_v50 = vld [vmem:[#allocation2 + $0xc0] sm:$0xff] }
  0x19   :  { %109 = vadd.xlane.f32.xlu1 %v72_v11  ;;  %1321 = vst [vmem:[#allocation18_spill] sm:$0xff] %v730_v49  ;;  %1322 = vst [vmem:[#allocation19_spill] sm:$0xff] %v732_v50  ;;  %v92_v51 = vmul.f32 %v634_v1, %v730_v49  ;;  %v91_v52 = vmul.f32 %v634_v1, %v732_v50  ;;  %v738_v53 = vld [vmem:[#allocation2 + $0xd8] sm:$0xff]  ;;  %v740_v54 = vld [vmem:[#allocation2 + $0xd0] sm:$0xff] }
  0x1a   :  { %107 = vadd.xlane.f32.xlu0 %v71_v12  ;;  %1323 = vst [vmem:[#allocation20_spill] sm:$0xff] %v738_v53  ;;  %1324 = vst [vmem:[#allocation21_spill] sm:$0xff] %v740_v54  ;;  %v94_v55 = vmul.f32 %v634_v1, %v738_v53  ;;  %v93_v56 = vmul.f32 %v634_v1, %v740_v54  ;;  %v746_v57 = vld [vmem:[#allocation2 + $0xe8] sm:$0xff]  ;;  %v748_v58 = vld [vmem:[#allocation2 + $0xe0] sm:$0xff] }
  0x1b   :  { %1325 = vst [vmem:[#allocation22_spill] sm:$0xff] %v746_v57  ;;  %1326 = vst [vmem:[#allocation23_spill] sm:$0xff] %v748_v58  ;;  %v96_v59 = vmul.f32 %v634_v1, %v746_v57  ;;  %v95_v60 = vmul.f32 %v634_v1, %v748_v58  ;;  %v754_v61 = vld [vmem:[#allocation2 + $0xf8] sm:$0xff]  ;;  %v756_v62 = vld [vmem:[#allocation2 + $0xf0] sm:$0xff] }
  0x1c   :  { %1327 = vst [vmem:[#allocation24_spill] sm:$0xff] %v754_v61  ;;  %v98_v63 = vmul.f32 %v634_v1, %v754_v61  ;;  %v97_v3 = vmul.f32 %v634_v1, %v756_v62 }
  0x1d   :  { %113 = vadd.xlane.f32.xlu1 %v74_v15 }
  0x1e   :  { %111 = vadd.xlane.f32.xlu0 %v73_v16 }
  0x21   :  { %117 = vadd.xlane.f32.xlu1 %v76_v19 }
  0x22   :  { %115 = vadd.xlane.f32.xlu0 %v75_v20 }
  0x25   :  { %121 = vadd.xlane.f32.xlu1 %v78_v23 }
  0x26   :  { %119 = vadd.xlane.f32.xlu0 %v77_v24 }
  0x29   :  { %125 = vadd.xlane.f32.xlu1 %v80_v27 }
  0x2a   :  { %123 = vadd.xlane.f32.xlu0 %v79_v28 }
  0x2d   :  { %129 = vadd.xlane.f32.xlu1 %v82_v31 }
  0x2e   :  { %127 = vadd.xlane.f32.xlu0 %v81_v32 }
  0x31   :  { %133 = vadd.xlane.f32.xlu1 %v84_v35 }
  0x32   :  { %131 = vadd.xlane.f32.xlu0 %v83_v36 }
  0x35   :  { %137 = vadd.xlane.f32.xlu1 %v86_v39 }
  0x36   :  { %135 = vadd.xlane.f32.xlu0 %v85_v40 }
  0x39   :  { %141 = vadd.xlane.f32.xlu1 %v88_v43 }
  0x3a   :  { %139 = vadd.xlane.f32.xlu0 %v87_v44 }
  0x3d   :  { %145 = vadd.xlane.f32.xlu1 %v90_v47 }
  0x3e   :  { %143 = vadd.xlane.f32.xlu0 %v89_v48 }
  0x41   :  { %149 = vadd.xlane.f32.xlu1 %v92_v51 }
  0x42   :  { %147 = vadd.xlane.f32.xlu0 %v91_v52 }
  0x45   :  { %153 = vadd.xlane.f32.xlu1 %v94_v55 }
  0x46   :  { %151 = vadd.xlane.f32.xlu0 %v93_v56 }
  0x49   :  { %157 = vadd.xlane.f32.xlu1 %v96_v59 }
  0x4a   :  { %155 = vadd.xlane.f32.xlu0 %v95_v60 }
  0x4d   :  { %161 = vadd.xlane.f32.xlu1 %v98_v63 }
  0x4e   :  { %159 = vadd.xlane.f32.xlu0 %v97_v3 }
  0x9a   :  { %v762_v4 = vpop.xlane.xlu1 %103 }
  0x9b   :  { %v764_v7 = vpop.xlane.xlu0 %99 }
  0x9e   :  { %v766_v8 = vpop.xlane.xlu1 %105 }
  0x9f   :  { %v768_v11 = vpop.xlane.xlu0 %101 }
  0xa2   :  { %v770_v12 = vpop.xlane.xlu1 %109 }
  0xa3   :  { %v772_v15 = vpop.xlane.xlu0 %107  ;;  %v164_v51 = vmax.f32 %v768_v11, %v770_v12 }
  0xa4   :  { %v163_v52 = vmax.f32 %v764_v7, %v772_v15 }
  0xa6   :  { %v774_v16 = vpop.xlane.xlu1 %113 }
  0xa7   :  { %v776_v19 = vpop.xlane.xlu0 %111  ;;  %v166_v59 = vmax.f32 %v766_v8, %v774_v16 }
  0xa8   :  { %v165_v60 = vmax.f32 %v762_v4, %v776_v19 }
  0xaa   :  { %v778_v20 = vpop.xlane.xlu1 %117 }
  0xab   :  { %v780_v1 = vpop.xlane.xlu0 %115  ;;  %v168_v63 = vmax.f32 %v164_v51, %v778_v20 }
  0xac   :  { %v167_v3 = vmax.f32 %v163_v52, %v780_v1 }
  0xae   :  { %v782_v23 = vpop.xlane.xlu1 %121 }
  0xaf   :  { %v784_v24 = vpop.xlane.xlu0 %119  ;;  %v170_v61 = vmax.f32 %v166_v59, %v782_v23 }
  0xb0   :  { %v169_v57 = vmax.f32 %v165_v60, %v784_v24 }
  0xb2   :  { %v786_v27 = vpop.xlane.xlu1 %125 }
  0xb3   :  { %v788_v28 = vpop.xlane.xlu0 %123  ;;  %v172_v58 = vmax.f32 %v168_v63, %v786_v27 }
  0xb4   :  { %v171_v53 = vmax.f32 %v167_v3, %v788_v28 }
  0xb6   :  { %v790_v31 = vpop.xlane.xlu1 %129 }
  0xb7   :  { %v792_v32 = vpop.xlane.xlu0 %127  ;;  %v174_v50 = vmax.f32 %v170_v61, %v790_v31 }
  0xb8   :  { %v173_v45 = vmax.f32 %v169_v57, %v792_v32 }
  0xba   :  { %v794_v35 = vpop.xlane.xlu1 %133 }
  0xbb   :  { %v796_v36 = vpop.xlane.xlu0 %131  ;;  %v176_v51 = vmax.f32 %v172_v58, %v794_v35 }
  0xbc   :  { %v175_v52 = vmax.f32 %v171_v53, %v796_v36 }
  0xbe   :  { %v798_v39 = vpop.xlane.xlu1 %137 }
  0xbf   :  { %v800_v40 = vpop.xlane.xlu0 %135  ;;  %v178_v59 = vmax.f32 %v174_v50, %v798_v39 }
  0xc0   :  { %v177_v60 = vmax.f32 %v173_v45, %v800_v40 }
  0xc2   :  { %v802_v43 = vpop.xlane.xlu1 %141 }
  0xc3   :  { %v804_v44 = vpop.xlane.xlu0 %139  ;;  %v180_v63 = vmax.f32 %v176_v51, %v802_v43 }
  0xc4   :  { %v179_v3 = vmax.f32 %v175_v52, %v804_v44 }
  0xc6   :  { %v806_v47 = vpop.xlane.xlu1 %145 }
  0xc7   :  { %v808_v48 = vpop.xlane.xlu0 %143  ;;  %v182_v61 = vmax.f32 %v178_v59, %v806_v47 }
  0xc8   :  { %v181_v57 = vmax.f32 %v177_v60, %v808_v48 }
  0xca   :  { %v814_v55 = vpop.xlane.xlu1 %149 }
  0xcb   :  { %v816_v56 = vpop.xlane.xlu0 %147  ;;  %v184_v58 = vmax.f32 %v180_v63, %v814_v55 }
  0xcc   :  { %v183_v53 = vmax.f32 %v179_v3, %v816_v56 }
  0xce   :  { %v828_v54 = vpop.xlane.xlu1 %153 }
  0xcf   :  { %v830_v49 = vpop.xlane.xlu0 %151  ;;  %v186_v50 = vmax.f32 %v182_v61, %v828_v54 }
  0xd0   :  { %v185_v45 = vmax.f32 %v181_v57, %v830_v49 }
  0xd2   :  { %v840_v46 = vpop.xlane.xlu1 %157 }
  0xd3   :  { %v842_v41 = vpop.xlane.xlu0 %155  ;;  %v188_v51 = vmax.f32 %v184_v58, %v840_v46 }
  0xd4   :  { %v187_v52 = vmax.f32 %v183_v53, %v842_v41 }
  0xd6   :  { %v852_v42 = vpop.xlane.xlu1 %161  ;;  %v191_v38 = vmax.f32 %v187_v52, %v188_v51 }
  0xd7   :  { %v854_v37 = vpop.xlane.xlu0 %159  ;;  %v190_v59 = vmax.f32 %v186_v50, %v852_v42 }
  0xd8   :  { %v189_v60 = vmax.f32 %v185_v45, %v854_v37 }
  0xda   :  { %v192_v63 = vmax.f32 %v189_v60, %v190_v59 }
  0xdc   :  { %v193_v33 = vmax.f32 %v191_v38, %v192_v63 }
  0xde   :  { %v194_v3 = vrot.slane %v193_v33, 4 }
  0xe0   :  { %v195_v34 = vmax.f32 %v193_v33, %v194_v3 }
  0xe2   :  { %v196_v61 = vrot.slane %v195_v34, 2 }
  0xe4   :  { %v197_v29 = vmax.f32 %v195_v34, %v196_v61 }
  0xe6   :  { %v198_v57 = vrot.slane %v197_v29, 1 }
  0xe8   :  { %v858_v30 = vmax.f32 %v197_v29, %v198_v57 }
  0xea   :  { %v200_v58 = vsub.f32 %v764_v7, %v858_v30  ;;  %v201_v53 = vsub.f32 %v768_v11, %v858_v30  ;;  %v202_v50 = vsub.f32 %v762_v4, %v858_v30  ;;  %v203_v45 = vsub.f32 %v766_v8, %v858_v30 }
  0xeb   :  { %v204_v33 = vsub.f32 %v772_v15, %v858_v30  ;;  %v205_v29 = vsub.f32 %v770_v12, %v858_v30  ;;  %v206_v11 = vsub.f32 %v776_v19, %v858_v30  ;;  %v207_v8 = vsub.f32 %v774_v16, %v858_v30 }
  0xec   :  { %v232_v38 = vmul.f32 1.442695, %v200_v58  ;;  %v234_v51 = vmul.f32 1.442695, %v201_v53  ;;  %v236_v34 = vmul.f32 1.442695, %v202_v50  ;;  %v208_v15 = vsub.f32 %v780_v1, %v858_v30 }
  0xed   :  { %v238_v7 = vmul.f32 1.442695, %v203_v45  ;;  %v240_v4 = vmul.f32 1.442695, %v204_v33  ;;  %v242_v52 = vmul.f32 1.442695, %v205_v29  ;;  %v209_v12 = vsub.f32 %v778_v20, %v858_v30 }
  0xee   :  { %489 = vpow2.f32 %v232_v38  ;;  %v244_v59 = vmul.f32 1.442695, %v206_v11  ;;  %v246_v60 = vmul.f32 1.442695, %v207_v8  ;;  %v210_v19 = vsub.f32 %v784_v24, %v858_v30 }
  0xef   :  { %491 = vpow2.f32 %v234_v51  ;;  %v248_v63 = vmul.f32 1.442695, %v208_v15  ;;  %v211_v16 = vsub.f32 %v782_v23, %v858_v30  ;;  %v250_v61 = vmul.f32 1.442695, %v209_v12 }
  0xf0   :  { %493 = vpow2.f32 %v236_v34  ;;  %v212_v57 = vsub.f32 %v788_v28, %v858_v30  ;;  %v252_v20 = vmul.f32 1.442695, %v210_v19  ;;  %v213_v53 = vsub.f32 %v786_v27, %v858_v30 }
  0xf1   :  { %495 = vpow2.f32 %v238_v7  ;;  %v254_v50 = vmul.f32 1.442695, %v211_v16  ;;  %v214_v38 = vsub.f32 %v792_v32, %v858_v30  ;;  %v215_v34 = vsub.f32 %v790_v31, %v858_v30 }
  0xf2   :  { %497 = vpow2.f32 %v240_v4  ;;  %v256_v28 = vmul.f32 1.442695, %v212_v57  ;;  %v258_v27 = vmul.f32 1.442695, %v213_v53  ;;  %v216_v11 = vsub.f32 %v796_v36, %v858_v30 }
  0xf3   :  { %499 = vpow2.f32 %v242_v52  ;;  %v260_v32 = vmul.f32 1.442695, %v214_v38  ;;  %v217_v52 = vsub.f32 %v794_v35, %v858_v30  ;;  %v262_v31 = vmul.f32 1.442695, %v215_v34 }
  0xf4   :  { %501 = vpow2.f32 %v244_v59  ;;  %v218_v12 = vsub.f32 %v800_v40, %v858_v30  ;;  %v264_v36 = vmul.f32 1.442695, %v216_v11  ;;  %v220_v57 = vsub.f32 %v804_v44, %v858_v30 }
  0xf5   :  { %503 = vpow2.f32 %v246_v60  ;;  %v266_v35 = vmul.f32 1.442695, %v217_v52  ;;  %v221_v53 = vsub.f32 %v802_v43, %v858_v30  ;;  %v222_v38 = vsub.f32 %v808_v48, %v858_v30 }
  0xf6   :  { %505 = vpow2.f32 %v248_v63  ;;  %v219_v63 = vsub.f32 %v798_v39, %v858_v30  ;;  %v268_v40 = vmul.f32 1.442695, %v218_v12  ;;  %v272_v44 = vmul.f32 1.442695, %v220_v57 }
  0xf7   :  { %507 = vpow2.f32 %v250_v61  ;;  %v223_v34 = vsub.f32 %v806_v47, %v858_v30  ;;  %v274_v43 = vmul.f32 1.442695, %v221_v53  ;;  %v224_v11 = vsub.f32 %v816_v56, %v858_v30 }
  0xf8   :  { %509 = vpow2.f32 %v252_v20  ;;  %v270_v39 = vmul.f32 1.442695, %v219_v63  ;;  %v276_v48 = vmul.f32 1.442695, %v222_v38  ;;  %v225_v52 = vsub.f32 %v814_v55, %v858_v30 }
  0xf9   :  { %511 = vpow2.f32 %v254_v50  ;;  %v278_v47 = vmul.f32 1.442695, %v223_v34  ;;  %v226_v12 = vsub.f32 %v830_v49, %v858_v30  ;;  %v280_v56 = vmul.f32 1.442695, %v224_v11 }
  0xfa   :  { %513 = vpow2.f32 %v256_v28  ;;  %v227_v63 = vsub.f32 %v828_v54, %v858_v30  ;;  %v282_v55 = vmul.f32 1.442695, %v225_v52  ;;  %v228_v57 = vsub.f32 %v842_v41, %v858_v30 }
  0xfb   :  { %v882_v3 = vpop.eup %489  ;;  %515 = vpow2.f32 %v258_v27  ;;  %v284_v49 = vmul.f32 1.442695, %v226_v12  ;;  %v229_v53 = vsub.f32 %v840_v46, %v858_v30  ;;  %v230_v38 = vsub.f32 %v854_v37, %v858_v30 }
  0xfc   :  { %v886_v1 = vpop.eup %491  ;;  %517 = vpow2.f32 %v260_v32  ;;  %v286_v54 = vmul.f32 1.442695, %v227_v63  ;;  %v288_v41 = vmul.f32 1.442695, %v228_v57  ;;  %v231_v34 = vsub.f32 %v852_v42, %v858_v30 }
  0xfd   :  { %v296_v58 = vadd.f32 %v886_v1, %v882_v3  ;;  %v892_v24 = vpop.eup %493  ;;  %519 = vpow2.f32 %v262_v31  ;;  %v290_v46 = vmul.f32 1.442695, %v229_v53  ;;  %v292_v11 = vmul.f32 1.442695, %v230_v38 }
  0xfe   :  { %v897_v45 = vpop.eup %495  ;;  %521 = vpow2.f32 %v264_v36 }
  0xff   :  { %v297_v23 = vadd.f32 %v892_v24, %v296_v58  ;;  %v902_v33 = vpop.eup %497  ;;  %523 = vpow2.f32 %v266_v35 }
 0x100   :  { %v907_v7 = vpop.eup %499  ;;  %525 = vpow2.f32 %v268_v40 }
 0x101   :  { %v298_v51 = vadd.f32 %v897_v45, %v297_v23  ;;  %v912_v8 = vpop.eup %501  ;;  %527 = vpow2.f32 %v270_v39 }
 0x102   :  { %v917_v59 = vpop.eup %503  ;;  %529 = vpow2.f32 %v272_v44 }
 0x103   :  { %v299_v29 = vadd.f32 %v902_v33, %v298_v51  ;;  %v922_v19 = vpop.eup %505  ;;  %531 = vpow2.f32 %v274_v43 }
 0x104   :  { %v927_v61 = vpop.eup %507  ;;  %533 = vpow2.f32 %v276_v48 }
 0x105   :  { %v300_v4 = vadd.f32 %v907_v7, %v299_v29  ;;  %v932_v58 = vpop.eup %509  ;;  %535 = vpow2.f32 %v278_v47 }
 0x106   :  { %v937_v23 = vpop.eup %511  ;;  %537 = vpow2.f32 %v280_v56 }
 0x107   :  { %v301_v15 = vadd.f32 %v912_v8, %v300_v4  ;;  %v942_v51 = vpop.eup %513  ;;  %539 = vpow2.f32 %v282_v55 }
 0x108   :  { %v947_v29 = vpop.eup %515  ;;  %541 = vpow2.f32 %v284_v49 }
 0x109   :  { %v302_v60 = vadd.f32 %v917_v59, %v301_v15  ;;  %v952_v4 = vpop.eup %517  ;;  %543 = vpow2.f32 %v286_v54 }
 0x10a   :  { %v957_v15 = vpop.eup %519  ;;  %545 = vpow2.f32 %v288_v41 }
 0x10b   :  { %v303_v16 = vadd.f32 %v922_v19, %v302_v60  ;;  %v962_v60 = vpop.eup %521  ;;  %547 = vpow2.f32 %v290_v46 }
 0x10c   :  { %549 = vpow2.f32 %v292_v11 }
 0x10d   :  { %v304_v20 = vadd.f32 %v927_v61, %v303_v16  ;;  %v967_v16 = vpop.eup %523 }
 0x10f   :  { %v305_v50 = vadd.f32 %v932_v58, %v304_v20  ;;  %v972_v20 = vpop.eup %525 }
 0x111   :  { %v306_v28 = vadd.f32 %v937_v23, %v305_v50  ;;  %v977_v50 = vpop.eup %527 }
 0x113   :  { %v307_v27 = vadd.f32 %v942_v51, %v306_v28  ;;  %v982_v28 = vpop.eup %529 }
 0x115   :  { %v308_v32 = vadd.f32 %v947_v29, %v307_v27  ;;  %v987_v27 = vpop.eup %531 }
 0x116   :  { %v990_v37 = vpop.eup %533 }
 0x117   :  { %v309_v31 = vadd.f32 %v952_v4, %v308_v32  ;;  %v294_v32 = vmul.f32 1.442695, %v231_v34  ;;  %v993_v47 = vpop.eup %535 }
 0x118   :  { %v996_v42 = vpop.eup %537 }
 0x119   :  { %v310_v36 = vadd.f32 %v957_v15, %v309_v31  ;;  %551 = vpow2.f32 %v294_v32  ;;  %v999_v12 = vpop.eup %539 }
 0x11b   :  { %v311_v35 = vadd.f32 %v962_v60, %v310_v36  ;;  %v1002_v36 = vpop.eup %541 }
 0x11c   :  { %v1005_v55 = vpop.eup %543 }
 0x11d   :  { %v312_v40 = vadd.f32 %v967_v16, %v311_v35  ;;  %v1008_v57 = vpop.eup %545 }
 0x11f   :  { %v313_v39 = vadd.f32 %v972_v20, %v312_v40  ;;  %v1011_v40 = vpop.eup %547 }
 0x120   :  { %v550_v54 = vpop.eup %549 }
 0x121   :  { %v314_v44 = vadd.f32 %v977_v50, %v313_v39 }
 0x123   :  { %v315_v43 = vadd.f32 %v982_v28, %v314_v44 }
 0x125   :  { %v316_v48 = vadd.f32 %v987_v27, %v315_v43 }
 0x126   :  { %v1014_v38 = vpop.eup %551 }
 0x127   :  { %v317_v52 = vadd.f32 %v990_v37, %v316_v48 }
 0x129   :  { %v318_v30 = vadd.f32 %v993_v47, %v317_v52 }
 0x12b   :  { %v319_v31 = vadd.f32 %v996_v42, %v318_v30 }
 0x12d   :  { %v320_v56 = vadd.f32 %v999_v12, %v319_v31 }
 0x12f   :  { %v321_v63 = vadd.f32 %v1002_v36, %v320_v56 }
 0x131   :  { %v322_v35 = vadd.f32 %v1005_v55, %v321_v63 }
 0x133   :  { %v323_v49 = vadd.f32 %v1008_v57, %v322_v35 }
 0x135   :  { %v324_v53 = vadd.f32 %v1011_v40, %v323_v49 }
 0x137   :  { %v325_v39 = vadd.f32 %v550_v54, %v324_v53 }
 0x139   :  { %v326_v41 = vadd.f32 %v1014_v38, %v325_v39 }
 0x13b   :  { %v327_v44 = vrot.slane %v326_v41, 4 }
 0x13d   :  { %v328_v34 = vadd.f32 %v327_v44, %v326_v41  ;;  %v1331_v41 = vld [vmem:[#allocation10_spill] sm:$0xff] }
 0x13f   :  { %v329_v46 = vrot.slane %v328_v34, 2 }
 0x141   :  { %v330_v43 = vadd.f32 %v329_v46, %v328_v34  ;;  %v1332_v34 = vld [vmem:[#allocation13_spill] sm:$0xff]  ;;  %v1334_v46 = vld [vmem:[#allocation15_spill] sm:$0xff] }
 0x143   :  { %v331_v11 = vrot.slane %v330_v43, 1 }
 0x145   :  { %v332_v48 = vadd.f32 %v331_v11, %v330_v43  ;;  %v1335_v11 = vld [vmem:[#allocation14_spill] sm:$0xff] }
 0x147   :  { %553 = vrcp.f32 %v332_v48 }
 0x154   :  { %v554_v32 = vpop.eup %553 }
 0x155   :  { %v364_v52 = vmul.f32 %v554_v32, %v550_v54  ;;  %v334_v30 = vmul.f32 %v554_v32, %v882_v3  ;;  %v335_v31 = vmul.f32 %v554_v32, %v886_v1  ;;  %v336_v56 = vmul.f32 %v554_v32, %v892_v24  ;;  %v1328_v54 = vld [vmem:[#allocation9_spill] sm:$0xff] }
 0x156   :  { %v1021_v63 = vmul.f32 %v554_v32, %v897_v45  ;;  %v1024_v35 = vmul.f32 %v554_v32, %v902_v33  ;;  %v1027_v49 = vmul.f32 %v554_v32, %v907_v7  ;;  %v1030_v53 = vmul.f32 %v554_v32, %v912_v8 }
 0x157   :  { %397 = vst.msk [vmem:[%s1293_s3 + $0xf0] sm:$0xff] %vm366_vm0, %v364_v52  ;;  %v429_v3 = vmul.f32 %v364_v52, %v756_v62  ;;  %v1038_v1 = vmul.f32 %v554_v32, %v917_v59  ;;  %v1041_v24 = vmul.f32 %v554_v32, %v922_v19  ;;  %v1044_v45 = vmul.f32 %v554_v32, %v927_v61 }
 0x158   :  { %367 = vst.msk [vmem:[%s1293_s3] sm:$0xff] %vm366_vm0, %v334_v30  ;;  %368 = vst.msk [vmem:[%s1293_s3 + $0x8] sm:$0xff] %vm366_vm0, %v335_v31  ;;  %v344_v62 = vmul.f32 %v554_v32, %v932_v58  ;;  %v1060_v33 = vmul.f32 %v554_v32, %v937_v23  ;;  %v1063_v7 = vmul.f32 %v554_v32, %v942_v51 }
 0x159   :  { %369 = vst.msk [vmem:[%s1293_s3 + $0x10] sm:$0xff] %vm366_vm0, %v336_v56  ;;  %v1066_v8 = vmul.f32 %v554_v32, %v947_v29  ;;  %370 = vst.msk [vmem:[%s1293_s3 + $0x18] sm:$0xff] %vm366_vm0, %v1021_v63  ;;  %v348_v59 = vmul.f32 %v554_v32, %v952_v4  ;;  %v349_v19 = vmul.f32 %v554_v32, %v957_v15 }
 0x15a   :  { %371 = vst.msk [vmem:[%s1293_s3 + $0x20] sm:$0xff] %vm366_vm0, %v1024_v35  ;;  %372 = vst.msk [vmem:[%s1293_s3 + $0x28] sm:$0xff] %vm366_vm0, %v1027_v49  ;;  %v350_v61 = vmul.f32 %v554_v32, %v962_v60  ;;  %v351_v58 = vmul.f32 %v554_v32, %v967_v16  ;;  %v352_v23 = vmul.f32 %v554_v32, %v972_v20 }
 0x15b   :  { %373 = vst.msk [vmem:[%s1293_s3 + $0x30] sm:$0xff] %vm366_vm0, %v1030_v53  ;;  %461 = vst [vmem:[#allocation5 + $0xf0] sm:$0xff] %v429_v3  ;;  %v1109_v51 = vmul.f32 %v554_v32, %v977_v50  ;;  %v1112_v29 = vmul.f32 %v554_v32, %v982_v28  ;;  %v1115_v4 = vmul.f32 %v554_v32, %v987_v27 }
 0x15c   :  { %374 = vst.msk [vmem:[%s1293_s3 + $0x38] sm:$0xff] %vm366_vm0, %v1038_v1  ;;  %375 = vst.msk [vmem:[%s1293_s3 + $0x40] sm:$0xff] %vm366_vm0, %v1041_v24  ;;  %v356_v15 = vmul.f32 %v554_v32, %v990_v37  ;;  %v1138_v60 = vmul.f32 %v554_v32, %v993_v47  ;;  %v1141_v16 = vmul.f32 %v554_v32, %v996_v42 }
 0x15d   :  { %376 = vst.msk [vmem:[%s1293_s3 + $0x48] sm:$0xff] %vm366_vm0, %v1044_v45  ;;  %377 = vst.msk [vmem:[%s1293_s3 + $0x50] sm:$0xff] %vm366_vm0, %v344_v62  ;;  %v1144_v20 = vmul.f32 %v554_v32, %v999_v12  ;;  %v360_v50 = vmul.f32 %v554_v32, %v1002_v36  ;;  %v1164_v28 = vmul.f32 %v554_v32, %v1005_v55 }
 0x15e   :  { %378 = vst.msk [vmem:[%s1293_s3 + $0x58] sm:$0xff] %vm366_vm0, %v1060_v33  ;;  %379 = vst.msk [vmem:[%s1293_s3 + $0x60] sm:$0xff] %vm366_vm0, %v1063_v7  ;;  %v1167_v27 = vmul.f32 %v554_v32, %v1008_v57  ;;  %v1170_v37 = vmul.f32 %v554_v32, %v1011_v40  ;;  %v365_v47 = vmul.f32 %v554_v32, %v1014_v38  ;;  %v1336_v32 = vld [vmem:[#allocation17_spill] sm:$0xff] }
 0x15f   :  { %380 = vst.msk [vmem:[%s1293_s3 + $0x68] sm:$0xff] %vm366_vm0, %v1066_v8  ;;  %381 = vst.msk [vmem:[%s1293_s3 + $0x70] sm:$0xff] %vm366_vm0, %v348_v59  ;;  %v399_v42 = vmul.f32 %v334_v30, %v636_v2  ;;  %v400_v12 = vmul.f32 %v335_v31, %v644_v6  ;;  %v401_v36 = vmul.f32 %v336_v56, %v629_v0  ;;  %v1337_v30 = vld [vmem:[#allocation16_spill] sm:$0xff]  ;;  %v1338_v56 = vld [vmem:[#allocation19_spill] sm:$0xff] }
 0x160   :  { %382 = vst.msk [vmem:[%s1293_s3 + $0x78] sm:$0xff] %vm366_vm0, %v349_v19  ;;  %383 = vst.msk [vmem:[%s1293_s3 + $0x80] sm:$0xff] %vm366_vm0, %v350_v61  ;;  %v402_v0 = vmul.f32 %v1021_v63, %v642_v5  ;;  %v403_v2 = vmul.f32 %v1024_v35, %v652_v10  ;;  %v404_v6 = vmul.f32 %v1027_v49, %v650_v9  ;;  %v1339_v35 = vld [vmem:[#allocation18_spill] sm:$0xff] }
 0x161   :  { %384 = vst.msk [vmem:[%s1293_s3 + $0x88] sm:$0xff] %vm366_vm0, %v351_v58  ;;  %385 = vst.msk [vmem:[%s1293_s3 + $0x90] sm:$0xff] %vm366_vm0, %v352_v23  ;;  %v405_v55 = vmul.f32 %v1030_v53, %v660_v14  ;;  %v406_v57 = vmul.f32 %v1038_v1, %v658_v13  ;;  %v407_v5 = vmul.f32 %v1041_v24, %v668_v18  ;;  %v1340_v53 = vld [vmem:[#allocation21_spill] sm:$0xff]  ;;  %v1341_v1 = vld [vmem:[#allocation20_spill] sm:$0xff] }
 0x162   :  { %386 = vst.msk [vmem:[%s1293_s3 + $0x98] sm:$0xff] %vm366_vm0, %v1109_v51  ;;  %387 = vst.msk [vmem:[%s1293_s3 + $0xa0] sm:$0xff] %vm366_vm0, %v1112_v29  ;;  %v408_v10 = vmul.f32 %v1044_v45, %v666_v17  ;;  %v409_v40 = vmul.f32 %v344_v62, %v676_v22  ;;  %v410_v9 = vmul.f32 %v1060_v33, %v674_v21  ;;  %v1329_v17 = vld [vmem:[#allocation8_spill] sm:$0xff]  ;;  %v1330_v22 = vld [vmem:[#allocation11_spill] sm:$0xff] }
 0x163   :  { %388 = vst.msk [vmem:[%s1293_s3 + $0xa8] sm:$0xff] %vm366_vm0, %v1115_v4  ;;  %389 = vst.msk [vmem:[%s1293_s3 + $0xb0] sm:$0xff] %vm366_vm0, %v356_v15  ;;  %v411_v14 = vmul.f32 %v1063_v7, %v684_v26  ;;  %v412_v13 = vmul.f32 %v1066_v8, %v682_v25  ;;  %v413_v39 = vmul.f32 %v348_v59, %v1328_v54  ;;  %v1333_v25 = vld [vmem:[#allocation12_spill] sm:$0xff]  ;;  %v1342_v45 = vld [vmem:[#allocation23_spill] sm:$0xff] }
 0x164   :  { %390 = vst.msk [vmem:[%s1293_s3 + $0xb8] sm:$0xff] %vm366_vm0, %v1138_v60  ;;  %391 = vst.msk [vmem:[%s1293_s3 + $0xc0] sm:$0xff] %vm366_vm0, %v1141_v16  ;;  %v414_v18 = vmul.f32 %v349_v19, %v1329_v17  ;;  %v415_v38 = vmul.f32 %v350_v61, %v1330_v22  ;;  %v416_v44 = vmul.f32 %v351_v58, %v1331_v41  ;;  %v1343_v33 = vld [vmem:[#allocation22_spill] sm:$0xff]  ;;  %v1344_v8 = vld [vmem:[#allocation24_spill] sm:$0xff] }
 0x165   :  { %392 = vst.msk [vmem:[%s1293_s3 + $0xc8] sm:$0xff] %vm366_vm0, %v1144_v20  ;;  %393 = vst.msk [vmem:[%s1293_s3 + $0xd0] sm:$0xff] %vm366_vm0, %v360_v50  ;;  %v417_v21 = vmul.f32 %v352_v23, %v1332_v34  ;;  %v418_v26 = vmul.f32 %v1109_v51, %v1333_v25  ;;  %v419_v43 = vmul.f32 %v1112_v29, %v1334_v46 }
 0x166   :  { %394 = vst.msk [vmem:[%s1293_s3 + $0xd8] sm:$0xff] %vm366_vm0, %v1164_v28  ;;  %395 = vst.msk [vmem:[%s1293_s3 + $0xe0] sm:$0xff] %vm366_vm0, %v1167_v27  ;;  %v420_v48 = vmul.f32 %v1115_v4, %v1335_v11  ;;  %v421_v52 = vmul.f32 %v356_v15, %v1336_v32  ;;  %v422_v31 = vmul.f32 %v1138_v60, %v1337_v30 }
 0x167   :  { %396 = vst.msk [vmem:[%s1293_s3 + $0xe8] sm:$0xff] %vm366_vm0, %v1170_v37  ;;  %398 = vst.msk [vmem:[%s1293_s3 + $0xf8] sm:$0xff] %vm366_vm0, %v365_v47  ;;  %s602_s3 = smov [#allocation5]   ;;  %v423_v63 = vmul.f32 %v1141_v16, %v1338_v56  ;;  %v424_v49 = vmul.f32 %v1144_v20, %v1339_v35  ;;  %v425_v3 = vmul.f32 %v360_v50, %v1340_v53 }
 0x168   :  { %431 = vst [vmem:[#allocation5] sm:$0xff] %v399_v42  ;;  %432 = vst [vmem:[#allocation5 + $0x8] sm:$0xff] %v400_v12  ;;  %s468_s29 = sshll.u32 %s602_s3, 4  ;;  %v426_v24 = vmul.f32 %v1164_v28, %v1341_v1  ;;  %v427_v62 = vmul.f32 %v1167_v27, %v1342_v45  ;;  %v428_v7 = vmul.f32 %v1170_v37, %v1343_v33  ;;  %s469_s29 = int_to_ptr.vmem [resolvable:$true] %s468_s29 }
 0x169   :  { %433 = vst [vmem:[#allocation5 + $0x10] sm:$0xff] %v401_v36  ;;  %434 = vst [vmem:[#allocation5 + $0x18] sm:$0xff] %v402_v0  ;;  %v430_v59 = vmul.f32 %v365_v47, %v1344_v8  ;;  %s575_s30 = scalar_lea.vmem %s469_s29, 4096  ;;  %p580_p6 = scmp.lt.s32.totalorder %s469_s29, %s469_s29 }
 0x16a   :  { %435 = vst [vmem:[#allocation5 + $0x20] sm:$0xff] %v403_v2  ;;  %436 = vst [vmem:[#allocation5 + $0x28] sm:$0xff] %v404_v6  ;;  %p576_p5 = scmp.ne.s32.totalorder %s469_s29, %s575_s30  ;;  %p581_p7 = scmp.lt.s32.totalorder %s575_s30, %s575_s30 }
 0x16b   :  { %437 = vst [vmem:[#allocation5 + $0x30] sm:$0xff] %v405_v55  ;;  %438 = vst [vmem:[#allocation5 + $0x38] sm:$0xff] %v406_v57 }
 0x16c   :  { %439 = vst [vmem:[#allocation5 + $0x40] sm:$0xff] %v407_v5  ;;  %440 = vst [vmem:[#allocation5 + $0x48] sm:$0xff] %v408_v10  ;;  %p582_p8 = por %p581_p7, %p580_p6 }
 0x16d   :  { %441 = vst [vmem:[#allocation5 + $0x50] sm:$0xff] %v409_v40  ;;  %442 = vst [vmem:[#allocation5 + $0x58] sm:$0xff] %v410_v9 }
 0x16e   :  { %443 = vst [vmem:[#allocation5 + $0x60] sm:$0xff] %v411_v14  ;;  %444 = vst [vmem:[#allocation5 + $0x68] sm:$0xff] %v412_v13  ;;  %p583_p9 = pnand %p582_p8, %p576_p5 }
 0x16f   :  { %445 = vst [vmem:[#allocation5 + $0x70] sm:$0xff] %v413_v39  ;;  %446 = vst [vmem:[#allocation5 + $0x78] sm:$0xff] %v414_v18 }
 0x170   :  { %447 = vst [vmem:[#allocation5 + $0x80] sm:$0xff] %v415_v38  ;;  %448 = vst [vmem:[#allocation5 + $0x88] sm:$0xff] %v416_v44 }
 0x171   :  { %449 = vst [vmem:[#allocation5 + $0x90] sm:$0xff] %v417_v21  ;;  %450 = vst [vmem:[#allocation5 + $0x98] sm:$0xff] %v418_v26 }
 0x172   :  { %451 = vst [vmem:[#allocation5 + $0xa0] sm:$0xff] %v419_v43  ;;  %452 = vst [vmem:[#allocation5 + $0xa8] sm:$0xff] %v420_v48 }
 0x173   :  { %453 = vst [vmem:[#allocation5 + $0xb0] sm:$0xff] %v421_v52  ;;  %454 = vst [vmem:[#allocation5 + $0xb8] sm:$0xff] %v422_v31 }
 0x174   :  { %455 = vst [vmem:[#allocation5 + $0xc0] sm:$0xff] %v423_v63  ;;  %456 = vst [vmem:[#allocation5 + $0xc8] sm:$0xff] %v424_v49 }
 0x175   :  { %457 = vst [vmem:[#allocation5 + $0xd0] sm:$0xff] %v425_v3  ;;  %458 = vst [vmem:[#allocation5 + $0xd8] sm:$0xff] %v426_v24 }
 0x176   :  { %459 = vst [vmem:[#allocation5 + $0xe0] sm:$0xff] %v427_v62  ;;  %460 = vst [vmem:[#allocation5 + $0xe8] sm:$0xff] %v428_v7 }
 0x177   :  { %462 = vst [vmem:[#allocation5 + $0xf8] sm:$0xff] %v430_v59 }
 0x178   :  { %586 = shalt.err (!%p583_p9)
}
 0x179   :  { %474 = dma.vmem_to_hbm [thread:$0]  %s469_s29, 4096, %s1292_s2, [#allocation4], %s600_s15, %s600_s15, %s601_s16  }
 0x17a   :  { %597 = dma.done.wait [#allocation4], 4096  }
 0x17b   :  { %598 = vsyncadd [#allocation4], 4294963200 }
 0x17c   :  { %482 = vsyncpa [#allocation3], 1 }
 0x17d   :  { %483 = vsyncpa [#allocation4], 1 }

</bundles_post_ra>
